<compile_context>
chip_gen: v7x
topology: tpu7x:2x2x1
jax: 0.10.0
libtpu: 0.0.40
codegen_flags: <defaults>
</compile_context>

<pallas_src>
import enum
from typing import Tuple

import jax
import jax.numpy as jnp
from jax.experimental import pallas as pl
from jax.experimental.pallas import tpu as pltpu


class EnvObservationType(enum.Enum):
    UNKNOWN = 0
    DISCRETE = 1
    CONTINUOUS = 2
    GRAY_2ch = 3
    GRAY_3ch = 4
    COLOR = 5
    SHAPE2 = 6
    SHAPE3 = 7


# ----------------------------------------------------------------------------
# Sizing helpers (padded-footprint aware, generation gated).
# ----------------------------------------------------------------------------
_VMEM_LIMIT_BYTES = 32 * 1024 * 1024   # scoped VMEM limit requested from Mosaic
_VMEM_BUDGET_BYTES = 24 * 1024 * 1024  # budget for our (double-buffered) blocks
_PALLAS_MIN_BYTES = 1 << 20            # below this, jnp/XLA fused transpose wins

_TC_PER_CHIP = None


def _tc_per_chip() -> int:
    """Best-effort TensorCore-per-chip count (2 on v7x, else 1)."""
    global _TC_PER_CHIP
    if _TC_PER_CHIP is None:
        try:
            kind = jax.devices()[0].device_kind.lower()
            _TC_PER_CHIP = 2 if "v7" in kind else 1
        except Exception:  # pragma: no cover - defensive
            _TC_PER_CHIP = 1
    return _TC_PER_CHIP


def _round_up(x: int, m: int) -> int:
    return ((x + m - 1) // m) * m


def _padded_item_bytes(shape: Tuple[int, ...], itemsize: int) -> int:
    """Padded VMEM bytes of one leading-axis item: last two dims pad to (8,128)."""
    if len(shape) == 1:
        return _round_up(int(shape[0]), 128) * itemsize
    lead = 1
    for d in shape[:-2]:
        lead *= int(d)
    return lead * _round_up(int(shape[-2]), 8) * _round_up(int(shape[-1]), 128) * itemsize


def _pick_tile(n: int, per_item_bytes: int, *, extra_bytes: int = 0):
    """Largest divisor t of n whose double-buffered padded footprint fits the
    VMEM budget.  On 2-TensorCore chips (v7x) keep >= 2 grid blocks so both
    cores get work; on single-core chips keep the block as big as possible."""
    budget = max(1, _VMEM_BUDGET_BYTES - extra_bytes)
    cap = max(1, budget // max(1, per_item_bytes))
    cap = min(cap, n)
    if _tc_per_chip() >= 2 and n >= 2:
        cap = min(cap, (n + 1) // 2)
    cap = max(1, cap)
    t = cap
    while n % t:
        t -= 1
    return t, cap


def _use_jnp_fallback(total_bytes: int, t: int, cap: int, n: int) -> bool:
    if total_bytes < _PALLAS_MIN_BYTES:
        return True            # tiny obs: launch overhead dominates, XLA fuses it
    if t * 4 < cap and (n // t) > 32:
        return True            # ragged/prime n: avoid swarms of tiny grid steps
    return False


# ----------------------------------------------------------------------------
# Flatten path (nn.Flatten): metadata-only reshape, no kernel, no HBM traffic.
# ----------------------------------------------------------------------------
def flatten_input(x: jax.Array) -> jax.Array:
    b = x.shape[0]
    f = 1
    for d in x.shape[1:]:
        f *= int(d)
    return jnp.reshape(x, (b, f))  # row-major == torch nn.Flatten


# ----------------------------------------------------------------------------
# Kernel 1: torch permute(0, 3, 2, 1):  (B, H, W, C) -> (B, C, W, H), C > 1.
# Input is presented as (B, H, W*C) so the lane dim is W*C (lane-dense DMA).
# Per item: one (H, W*C) -> (W*C, H) XLU transpose into VMEM scratch, then C
# sublane-strided reads scatter the channels into the (B, C, W, H) output.
# ----------------------------------------------------------------------------
def _make_bhwc_to_bcwh_kernel(tb: int, c: int, w: int, unroll: bool):
    def kernel(x_ref, o_ref, t_ref):
        def one_item(bi):
            t_ref[...] = x_ref[bi].T                      # (H, W*C) -> (W*C, H)
            for ci in range(c):                           # tiny static channel loop
                o_ref[bi, ci, :, :] = t_ref[pl.ds(ci, w, stride=c), :]

        if tb == 1:
            one_item(0)
        else:
            def body(bi, carry):
                one_item(bi)
                return carry
            jax.lax.fori_loop(0, tb, body, 0, unroll=unroll)
    return kernel


def permute_bhwc_to_bcwh(x: jax.Array) -> jax.Array:
    b, h, w, c = (int(d) for d in x.shape)
    if c == 1:
        # Lane-hostile C=1 block: metadata-route through the (H,W)-last kernel.
        return transpose_last2_pallas(jnp.reshape(x, (b, 1, h, w)))

    itemsize = x.dtype.itemsize
    total_bytes = x.size * itemsize
    scratch_bytes = _padded_item_bytes((w * c, h), itemsize)
    per_item = 2 * (_padded_item_bytes((h, w * c), itemsize)
                    + _padded_item_bytes((c, w, h), itemsize))
    tb, cap = _pick_tile(b, per_item, extra_bytes=scratch_bytes)
    if _use_jnp_fallback(total_bytes, tb, cap, b):
        return jnp.transpose(x, (0, 3, 2, 1))

    xf = jnp.reshape(x, (b, h, w * c))                    # metadata-only fuse (W, C)
    return pl.pallas_call(
        _make_bhwc_to_bcwh_kernel(tb, c, w, unroll=(tb <= 8)),
        out_shape=jax.ShapeDtypeStruct((b, c, w, h), x.dtype),
        grid=(b // tb,),
        in_specs=[pl.BlockSpec((tb, h, w * c), lambda i: (i, 0, 0))],
        out_specs=pl.BlockSpec((tb, c, w, h), lambda i: (i, 0, 0, 0)),
        scratch_shapes=[pltpu.VMEM((w * c, h), x.dtype)],
        compiler_params=pltpu.CompilerParams(
            dimension_semantics=("parallel",),
            vmem_limit_bytes=_VMEM_LIMIT_BYTES),
    )(xf)


# ----------------------------------------------------------------------------
# Kernel 2: torch permute(0, 1, 3, 2):  (..., H, W) -> (..., W, H).
# Leading dims are fused into one axis with a metadata reshape; the grid runs
# over tiles of that axis; per item a single (H, W) XLU transpose.
# ----------------------------------------------------------------------------
def _make_swap_last2_kernel(tn: int, unroll: bool):
    def kernel(x_ref, o_ref):
        if tn == 1:
            o_ref[0, :, :] = x_ref[0].T
        else:
            def body(ni, carry):
                o_ref[ni, :, :] = x_ref[ni].T
                return carry
            jax.lax.fori_loop(0, tn, body, 0, unroll=unroll)
    return kernel


def transpose_last2_pallas(x: jax.Array) -> jax.Array:
    assert x.ndim >= 3
    *lead, h, w = (int(d) for d in x.shape)
    n = 1
    for d in lead:
        n *= d

    itemsize = x.dtype.itemsize
    total_bytes = x.size * itemsize
    per_item = 2 * (_padded_item_bytes((h, w), itemsize)
                    + _padded_item_bytes((w, h), itemsize))
    tn, cap = _pick_tile(n, per_item)
    if _use_jnp_fallback(total_bytes, tn, cap, n):
        perm = tuple(range(x.ndim - 2)) + (x.ndim - 1, x.ndim - 2)
        return jnp.transpose(x, perm)

    xf = jnp.reshape(x, (n, h, w))                        # metadata-only fuse
    yf = pl.pallas_call(
        _make_swap_last2_kernel(tn, unroll=(tn <= 8)),
        out_shape=jax.ShapeDtypeStruct((n, w, h), x.dtype),
        grid=(n // tn,),
        in_specs=[pl.BlockSpec((tn, h, w), lambda i: (i, 0, 0))],
        out_specs=pl.BlockSpec((tn, w, h), lambda i: (i, 0, 0)),
        compiler_params=pltpu.CompilerParams(
            dimension_semantics=("parallel",),
            vmem_limit_bytes=_VMEM_LIMIT_BYTES),
    )(xf)
    return jnp.reshape(yf, tuple(lead) + (w, h))          # metadata-only un-fuse


# ----------------------------------------------------------------------------
# InputLayer: same dispatch logic as the torch module (no parameters).
# ----------------------------------------------------------------------------
class InputLayer:
    def __init__(self, observation_shape: Tuple[int, ...],
                 observation_type: EnvObservationType):
        self.err_msg = f"unknown observation_type: {observation_type}"
        self.observation_shape = observation_shape
        self.observation_type = observation_type

    def is_image_head(self) -> bool:
        return not (self.observation_type == EnvObservationType.DISCRETE
                    or self.observation_type == EnvObservationType.CONTINUOUS
                    or self.observation_type == EnvObservationType.UNKNOWN)

    def __call__(self, x: jax.Array) -> jax.Array:
        t = self.observation_type
        if t in (EnvObservationType.DISCRETE, EnvObservationType.CONTINUOUS,
                 EnvObservationType.UNKNOWN):
            return flatten_input(x)
        if t == EnvObservationType.GRAY_2ch:
            if len(self.observation_shape) == 2:
                # (B,H,W) -> (B,H,W,1) -> permute(0,3,2,1)  ==  (B,1,H,W) -> swap last 2
                return permute_bhwc_to_bcwh(jnp.reshape(x, x.shape + (1,)))
            if len(self.observation_shape) == 3:
                return transpose_last2_pallas(x)
            raise ValueError(self.err_msg)
        if t == EnvObservationType.GRAY_3ch:
            assert self.observation_shape[-1] == 1
            if len(self.observation_shape) == 3:
                return permute_bhwc_to_bcwh(x)
            if len(self.observation_shape) == 4:
                # jnp.reshape raises loudly if trailing dims are not all 1.
                return transpose_last2_pallas(jnp.reshape(x, x.shape[:4]))
            raise ValueError(self.err_msg)
        if t == EnvObservationType.COLOR:
            if len(self.observation_shape) == 3:
                return permute_bhwc_to_bcwh(x)
            raise ValueError(self.err_msg)
        if t == EnvObservationType.SHAPE2:
            if len(self.observation_shape) == 2:
                return permute_bhwc_to_bcwh(jnp.reshape(x, x.shape + (1,)))
            if len(self.observation_shape) == 3:
                return transpose_last2_pallas(x)
            raise ValueError(self.err_msg)
        if t == EnvObservationType.SHAPE3:
            if len(self.observation_shape) == 3:
                return transpose_last2_pallas(x)
            raise ValueError(self.err_msg)
        raise ValueError(self.err_msg)


if __name__ == "__main__":
    key = jax.random.PRNGKey(0)
    ks = jax.random.split(key, 8)

    # 1) CONTINUOUS: flatten.  obs=(4,16,16), x:(2,4,16,16) -> (2,1024)
    x = jax.random.normal(ks[0], (2, 4, 16, 16), jnp.float32)
    y = jax.block_until_ready(InputLayer((4, 16, 16), EnvObservationType.CONTINUOUS)(x))
    assert y.shape == (2, 1024) and jnp.array_equal(y, jnp.reshape(x, (2, -1)))

    # 2) COLOR, tiny (jnp fallback path): (2,16,16,3) -> (2,3,16,16)
    x = jax.random.normal(ks[1], (2, 16, 16, 3), jnp.float32)
    y = jax.block_until_ready(InputLayer((16, 16, 3), EnvObservationType.COLOR)(x))
    assert y.shape == (2, 3, 16, 16) and jnp.array_equal(y, jnp.transpose(x, (0, 3, 2, 1)))

    # 3) COLOR, Pallas kernel 1 (lane-dense W*C): (16,84,84,3) -> (16,3,84,84)
    x = jax.random.normal(ks[2], (16, 84, 84, 3), jnp.float32)
    y = jax.block_until_ready(InputLayer((84, 84, 3), EnvObservationType.COLOR)(x))
    assert y.shape == (16, 3, 84, 84) and jnp.array_equal(y, jnp.transpose(x, (0, 3, 2, 1)))

    # 4) SHAPE3, tiny (jnp fallback): (2,4,16,16) -> (2,4,16,16) swapped last 2
    x = jax.random.normal(ks[3], (2, 4, 16, 16), jnp.float32)
    y = jax.block_until_ready(InputLayer((4, 16, 16), EnvObservationType.SHAPE3)(x))
    assert y.shape == (2, 4, 16, 16) and jnp.array_equal(y, jnp.transpose(x, (0, 1, 3, 2)))

    # 5) SHAPE3, Pallas kernel 2: (8,4,128,128) -> (8,4,128,128) swapped last 2
    x = jax.random.normal(ks[4], (8, 4, 128, 128), jnp.float32)
    y = jax.block_until_ready(InputLayer((4, 128, 128), EnvObservationType.SHAPE3)(x))
    assert y.shape == (8, 4, 128, 128) and jnp.array_equal(y, jnp.transpose(x, (0, 1, 3, 2)))

    # 6) GRAY_2ch 2-D, tiny: (2,16,16) -> (2,1,16,16)
    x = jax.random.normal(ks[5], (2, 16, 16), jnp.float32)
    y = jax.block_until_ready(InputLayer((16, 16), EnvObservationType.GRAY_2ch)(x))
    ref = jnp.transpose(jnp.reshape(x, (2, 16, 16, 1)), (0, 3, 2, 1))
    assert y.shape == (2, 1, 16, 16) and jnp.array_equal(y, ref)

    # 7) GRAY_2ch 2-D, large enough for the Pallas C==1 rerouted path:
    #    (32,128,128) -> (32,1,128,128)
    x = jax.random.normal(ks[6], (32, 128, 128), jnp.float32)
    y = jax.block_until_ready(InputLayer((128, 128), EnvObservationType.GRAY_2ch)(x))
    ref = jnp.transpose(jnp.reshape(x, (32, 128, 128, 1)), (0, 3, 2, 1))
    assert y.shape == (32, 1, 128, 128) and jnp.array_equal(y, ref)

    # 8) GRAY_3ch 3-D (C==1 reroute), tiny: (4,84,84,1) -> (4,1,84,84)
    x = jax.random.normal(ks[7], (4, 84, 84, 1), jnp.float32)
    y = jax.block_until_ready(InputLayer((84, 84, 1), EnvObservationType.GRAY_3ch)(x))
    assert y.shape == (4, 1, 84, 84) and jnp.array_equal(y, jnp.transpose(x, (0, 3, 2, 1)))

    print("KERNEL_OK")
</pallas_src>

<mosaic_0001>
module attributes {stable_mosaic.version = 11 : i64} {
  func.func @kernel(%arg0: i32, %arg1: memref<16x84x252xf32, #tpu.memory_space<vmem>>, %arg2: memref<16x3x84x84xf32, #tpu.memory_space<vmem>>, %arg3: memref<252x84xf32, #tpu.memory_space<vmem>>) attributes {dimension_semantics = [#tpu.dimension_semantics<parallel>], iteration_bounds = array<i64: 1>, scalar_prefetch = 0 : i64, scratch_operands = 1 : i64, tpu.core_type = #tpu.core_type<tc>, window_params = [{transform_indices = @transform_0, window_bounds = array<i64: 16, 84, 252>}, {transform_indices = @transform_1, window_bounds = array<i64: 16, 3, 84, 84>}]} {
    %c0_i32 = arith.constant 0 : i32
    %c16_i32 = arith.constant 16 : i32
    %0 = arith.addi %c0_i32, %c16_i32 : i32
    %c1_i32 = arith.constant 1 : i32
    scf.for %arg4 = %c0_i32 to %0 step %c1_i32  : i32 {
      %1 = arith.index_cast %arg4 : i32 to index
      %c0 = arith.constant 0 : index
      %c0_1 = arith.constant 0 : index
      %2 = vector.load %arg1[%1, %c0, %c0_1] : memref<16x84x252xf32, #tpu.memory_space<vmem>>, vector<1x84x252xf32>
      %3 = vector.shape_cast %2 : vector<1x84x252xf32> to vector<84x252xf32>
      %4 = tpu.transpose %3, [1, 0] : vector<84x252xf32> -> vector<252x84xf32>
      %c0_2 = arith.constant 0 : index
      %c0_3 = arith.constant 0 : index
      %5 = vector.load %arg3[%c0_2, %c0_3] : memref<252x84xf32, #tpu.memory_space<vmem>>, vector<252x84xf32>
      tpu.vector_store %arg3[%c0_2, %c0_3], %4 {strides = array<i32>} : memref<252x84xf32, #tpu.memory_space<vmem>>, vector<252x84xf32>,
      %c0_4 = arith.constant 0 : index
      %c0_5 = arith.constant 0 : index
      %6 = tpu.strided_load %arg3[%c0_4, %c0_5] {strides = array<i32: 3, 1>} : memref<252x84xf32, #tpu.memory_space<vmem>>, vector<84x84xf32>
      %7 = arith.index_cast %arg4 : i32 to index
      %c0_6 = arith.constant 0 : index
      %c0_7 = arith.constant 0 : index
      %c0_8 = arith.constant 0 : index
      %8 = vector.load %arg2[%7, %c0_6, %c0_7, %c0_8] : memref<16x3x84x84xf32, #tpu.memory_space<vmem>>, vector<1x1x84x84xf32>
      %9 = vector.shape_cast %8 : vector<1x1x84x84xf32> to vector<84x84xf32>
      %10 = vector.shape_cast %6 : vector<84x84xf32> to vector<1x1x84x84xf32>
      tpu.vector_store %arg2[%7, %c0_6, %c0_7, %c0_8], %10 {strides = array<i32>} : memref<16x3x84x84xf32, #tpu.memory_space<vmem>>, vector<1x1x84x84xf32>,
      %c1 = arith.constant 1 : index
      %c0_9 = arith.constant 0 : index
      %11 = tpu.strided_load %arg3[%c1, %c0_9] {strides = array<i32: 3, 1>} : memref<252x84xf32, #tpu.memory_space<vmem>>, vector<84x84xf32>
      %12 = arith.index_cast %arg4 : i32 to index
      %c1_10 = arith.constant 1 : index
      %c0_11 = arith.constant 0 : index
      %c0_12 = arith.constant 0 : index
      %13 = vector.load %arg2[%12, %c1_10, %c0_11, %c0_12] : memref<16x3x84x84xf32, #tpu.memory_space<vmem>>, vector<1x1x84x84xf32>
      %14 = vector.shape_cast %13 : vector<1x1x84x84xf32> to vector<84x84xf32>
      %15 = vector.shape_cast %11 : vector<84x84xf32> to vector<1x1x84x84xf32>
      tpu.vector_store %arg2[%12, %c1_10, %c0_11, %c0_12], %15 {strides = array<i32>} : memref<16x3x84x84xf32, #tpu.memory_space<vmem>>, vector<1x1x84x84xf32>,
      %c2 = arith.constant 2 : index
      %c0_13 = arith.constant 0 : index
      %16 = tpu.strided_load %arg3[%c2, %c0_13] {strides = array<i32: 3, 1>} : memref<252x84xf32, #tpu.memory_space<vmem>>, vector<84x84xf32>
      %17 = arith.index_cast %arg4 : i32 to index
      %c2_14 = arith.constant 2 : index
      %c0_15 = arith.constant 0 : index
      %c0_16 = arith.constant 0 : index
      %18 = vector.load %arg2[%17, %c2_14, %c0_15, %c0_16] : memref<16x3x84x84xf32, #tpu.memory_space<vmem>>, vector<1x1x84x84xf32>
      %19 = vector.shape_cast %18 : vector<1x1x84x84xf32> to vector<84x84xf32>
      %20 = vector.shape_cast %16 : vector<84x84xf32> to vector<1x1x84x84xf32>
      tpu.vector_store %arg2[%17, %c2_14, %c0_15, %c0_16], %20 {strides = array<i32>} : memref<16x3x84x84xf32, #tpu.memory_space<vmem>>, vector<1x1x84x84xf32>,
    }
    %c16_i32_0 = arith.constant 16 : i32
    return
  }
  func.func @transform_0(%arg0: i32) -> (i32, i32, i32) {
    %c0_i32 = arith.constant 0 : i32
    %c0_i32_0 = arith.constant 0 : i32
    %c0_i32_1 = arith.constant 0 : i32
    return %arg0, %c0_i32, %c0_i32_0 : i32, i32, i32
  }
  func.func @transform_1(%arg0: i32) -> (i32, i32, i32, i32) {
    %c0_i32 = arith.constant 0 : i32
    %c0_i32_0 = arith.constant 0 : i32
    %c0_i32_1 = arith.constant 0 : i32
    %c0_i32_2 = arith.constant 0 : i32
    return %arg0, %c0_i32, %c0_i32_0, %c0_i32_1 : i32, i32, i32, i32
  }
}

</mosaic_0001>

<bundles_post_ra>
// kernel: tpu_custom_call.1
= control target key start
LH: loop header
LB: loop body
LE: loop exit
PB: predicated region body
PF: predicated region fallthrough
CT: control target
= control target key end

     0   :  { %s311_s6 = smov 0   ;;  %s451_s0 = inlined_call_operand.vmem [shape: f32[16,84,252], index: 0, kind: input, shape index: {}]   ;;  %s452_s1 = inlined_call_operand.vmem [shape: f32[16,3,84,84], index: 1, kind: output, shape index: {}]  }
   0x1 LB: > { %s283_s7 = smul.u32 176, %s299_s6  ;;  %vm103_vm0 = vcmask 687104   ;;  %vm135_vm1 = vcmask 683008   ;;  %s299_s6 = sphi %s311_s6, %s13_s6  }
   0x2   : > { %s158_s11 = smul.u32 264, %s299_s6  ;;  %s13_s6 = sadd.s32 1, %s299_s6  }
   0x3   : > { %s320_s10 = scalar_lea.vmem %s451_s0, %s283_s7  ;;  %p10_p0 = scmp.ge.s32.totalorder %s13_s6, 16  }
   0x4   : > { %v18_v0 = vld [vmem:[%s320_s10 + $0x8] sm:$0xff]  ;;  %v17_v1 = vld [vmem:[%s320_s10] sm:$0xff]  ;;  %v20_v2 = vld [vmem:[%s320_s10 + $0x18] sm:$0xff]  ;;  %s356_s14 = scalar_lea.vmem %s452_s1, %s158_s11 }
   0x5   : > { %71 = vxpose.xlu1.b32.start [1/11] (short) %v18_v0, 128  ;;  %39 = vxpose.xlu0.b32.start [1/11] (short) %v17_v1, 128  ;;  %v19_v3 = vld [vmem:[%s320_s10 + $0x10] sm:$0xff]  ;;  %v22_v4 = vld [vmem:[%s320_s10 + $0x28] sm:$0xff]  ;;  %v21_v5 = vld [vmem:[%s320_s10 + $0x20] sm:$0xff] }
   0x6   : > { %v24_v6 = vld [vmem:[%s320_s10 + $0x38] sm:$0xff]  ;;  %v23_v7 = vld [vmem:[%s320_s10 + $0x30] sm:$0xff]  ;;  %v26_v8 = vld [vmem:[%s320_s10 + $0x48] sm:$0xff] }
   0x7   : > { %v25_v9 = vld [vmem:[%s320_s10 + $0x40] sm:$0xff]  ;;  %v28_v10 = vld [vmem:[%s320_s10 + $0x58] sm:$0xff]  ;;  %v27_v11 = vld [vmem:[%s320_s10 + $0x50] sm:$0xff] }
   0x8   : > { %v30_v12 = vld [vmem:[%s320_s10 + $0x68] sm:$0xff]  ;;  %v29_v13 = vld [vmem:[%s320_s10 + $0x60] sm:$0xff]  ;;  %v32_v14 = vld [vmem:[%s320_s10 + $0x78] sm:$0xff] }
   0x9   : > { %72 = vxpose.xlu1.b32.cont [2/11] (short) %v20_v2, 128  ;;  %40 = vxpose.xlu0.b32.cont [2/11] (short) %v19_v3, 128  ;;  %v31_v15 = vld [vmem:[%s320_s10 + $0x70] sm:$0xff]  ;;  %v34_v16 = vld [vmem:[%s320_s10 + $0x88] sm:$0xff]  ;;  %v33_v17 = vld [vmem:[%s320_s10 + $0x80] sm:$0xff] }
   0xa   : > { %v36_v18 = vld [vmem:[%s320_s10 + $0x98] sm:$0xff]  ;;  %v35_v19 = vld [vmem:[%s320_s10 + $0x90] sm:$0xff]  ;;  %v38_v20 = vld [vmem:[%s320_s10 + $0xa8] sm:$0xf] }
   0xb   : > { %v37_v21 = vld [vmem:[%s320_s10 + $0xa0] sm:$0xf] }
   0xd   : > { %73 = vxpose.xlu1.b32.cont [3/11] (short) %v22_v4, 128  ;;  %41 = vxpose.xlu0.b32.cont [3/11] (short) %v21_v5, 128 }
  0x11   : > { %74 = vxpose.xlu1.b32.cont [4/11] (short) %v24_v6, 128  ;;  %42 = vxpose.xlu0.b32.cont [4/11] (short) %v23_v7, 128 }
  0x15   : > { %75 = vxpose.xlu1.b32.cont [5/11] (short) %v26_v8, 128  ;;  %43 = vxpose.xlu0.b32.cont [5/11] (short) %v25_v9, 128 }
  0x19   : > { %76 = vxpose.xlu1.b32.cont [6/11] (short) %v28_v10, 128  ;;  %44 = vxpose.xlu0.b32.cont [6/11] (short) %v27_v11, 128 }
  0x1d   : > { %77 = vxpose.xlu1.b32.cont [7/11] (short) %v30_v12, 128  ;;  %45 = vxpose.xlu0.b32.cont [7/11] (short) %v29_v13, 128 }
  0x21   : > { %78 = vxpose.xlu1.b32.cont [8/11] (short) %v32_v14, 128  ;;  %46 = vxpose.xlu0.b32.cont [8/11] (short) %v31_v15, 128 }
  0x25   : > { %79 = vxpose.xlu1.b32.cont [9/11] (short) %v34_v16, 128  ;;  %47 = vxpose.xlu0.b32.cont [9/11] (short) %v33_v17, 128 }
  0x29   : > { %80 = vxpose.xlu1.b32.cont [10/11] (short) %v36_v18, 128  ;;  %48 = vxpose.xlu0.b32.cont [10/11] (short) %v35_v19, 128 }
  0x2d   : > { %81 = vxpose.xlu1.b32.end [11/11] (short) %v38_v20, 128  ;;  %49 = vxpose.xlu0.b32.end [11/11] (short) %v37_v21, 128 }
  0x85   : > { %v87_v22 = vpop.trf.xlu1  ;;  %v55_v23 = vpop.trf.xlu0 }
  0x86   : > { %120 = vst.msk [vmem:[#allocation2 + $0x80] sm:$0xff] %vm103_vm0, %v87_v22  ;;  %104 = vst.msk [vmem:[#allocation2] sm:$0xff] %vm103_vm0, %v55_v23 }
  0x89   : > { %v88_v24 = vpop.trf.xlu1  ;;  %v56_v25 = vpop.trf.xlu0 }
  0x8a   : > { %121 = vst.msk [vmem:[#allocation2 + $0x88] sm:$0xff] %vm103_vm0, %v88_v24  ;;  %105 = vst.msk [vmem:[#allocation2 + $0x8] sm:$0xff] %vm103_vm0, %v56_v25 }
  0x8d   : > { %v89_v26 = vpop.trf.xlu1  ;;  %v57_v27 = vpop.trf.xlu0 }
  0x8e   : > { %122 = vst.msk [vmem:[#allocation2 + $0x90] sm:$0xff] %vm103_vm0, %v89_v26  ;;  %106 = vst.msk [vmem:[#allocation2 + $0x10] sm:$0xff] %vm103_vm0, %v57_v27 }
  0x91   : > { %v90_v28 = vpop.trf.xlu1  ;;  %v58_v29 = vpop.trf.xlu0 }
  0x92   : > { %123 = vst.msk [vmem:[#allocation2 + $0x98] sm:$0xff] %vm103_vm0, %v90_v28  ;;  %107 = vst.msk [vmem:[#allocation2 + $0x18] sm:$0xff] %vm103_vm0, %v58_v29 }
  0x95   : > { %v137_v30 = vld [vmem:[#allocation2] ss:$3 sm:$0xff]  ;;  %v172_v31 = vld [vmem:[#allocation2 + $0x1] ss:$3 sm:$0xff]  ;;  %v207_v32 = vld [vmem:[#allocation2 + $0x2] ss:$3 sm:$0xff]  ;;  %v91_v33 = vpop.trf.xlu1  ;;  %v59_v34 = vpop.trf.xlu0 }
  0x96   : > { %160 = vst.msk [vmem:[%s356_s14] sm:$0xff] %vm103_vm0, %v137_v30  ;;  %261 = vst.msk [vmem:[%s356_s14 + $0x58] sm:$0xff] %vm103_vm0, %v172_v31 }
  0x97   : > { %272 = vst.msk [vmem:[%s356_s14 + $0xb0] sm:$0xff] %vm103_vm0, %v207_v32  ;;  %124 = vst.msk [vmem:[#allocation2 + $0xa0] sm:$0xff] %vm103_vm0, %v91_v33 }
  0x98   : > { %108 = vst.msk [vmem:[#allocation2 + $0x20] sm:$0xff] %vm103_vm0, %v59_v34 }
  0x99   : > { %v92_v35 = vpop.trf.xlu1  ;;  %v60_v36 = vpop.trf.xlu0 }
  0x9a   : > { %125 = vst.msk [vmem:[#allocation2 + $0xa8] sm:$0xff] %vm103_vm0, %v92_v35  ;;  %109 = vst.msk [vmem:[#allocation2 + $0x28] sm:$0xff] %vm103_vm0, %v60_v36 }
  0x9d   : > { %v93_v40 = vpop.trf.xlu1  ;;  %v61_v41 = vpop.trf.xlu0 }
  0x9e   : > { %v149_v37 = vld [vmem:[#allocation2 + $0x90] ss:$3 sm:$0xff]  ;;  %v184_v38 = vld [vmem:[#allocation2 + $0x91] ss:$3 sm:$0xff]  ;;  %v219_v39 = vld [vmem:[#allocation2 + $0x92] ss:$3 sm:$0xff] }
  0x9f   : > { %166 = vst.msk [vmem:[%s356_s14 + $0x30] sm:$0xff] %vm103_vm0, %v149_v37  ;;  %267 = vst.msk [vmem:[%s356_s14 + $0x88] sm:$0xff] %vm103_vm0, %v184_v38 }
  0xa0   : > { %278 = vst.msk [vmem:[%s356_s14 + $0xe0] sm:$0xff] %vm103_vm0, %v219_v39  ;;  %126 = vst.msk [vmem:[#allocation2 + $0xb0] sm:$0xff] %vm103_vm0, %v93_v40 }
  0xa1   : > { %110 = vst.msk [vmem:[#allocation2 + $0x30] sm:$0xff] %vm103_vm0, %v61_v41  ;;  %v139_v42 = vld [vmem:[#allocation2 + $0x18] ss:$3 sm:$0xff]  ;;  %v174_v43 = vld [vmem:[#allocation2 + $0x19] ss:$3 sm:$0xff]  ;;  %v94_v45 = vpop.trf.xlu1  ;;  %v62_v46 = vpop.trf.xlu0 }
  0xa2   : > { %v209_v44 = vld [vmem:[#allocation2 + $0x1a] ss:$3 sm:$0xff]  ;;  %161 = vst.msk [vmem:[%s356_s14 + $0x8] sm:$0xff] %vm103_vm0, %v139_v42  ;;  %262 = vst.msk [vmem:[%s356_s14 + $0x60] sm:$0xff] %vm103_vm0, %v174_v43 }
  0xa3   : > { %273 = vst.msk [vmem:[%s356_s14 + $0xb8] sm:$0xff] %vm103_vm0, %v209_v44  ;;  %127 = vst.msk [vmem:[#allocation2 + $0xb8] sm:$0xff] %vm103_vm0, %v94_v45 }
  0xa4   : > { %111 = vst.msk [vmem:[#allocation2 + $0x38] sm:$0xff] %vm103_vm0, %v62_v46 }
  0xa5   : > { %v95_v47 = vpop.trf.xlu1  ;;  %v63_v48 = vpop.trf.xlu0 }
  0xa6   : > { %128 = vst.msk [vmem:[#allocation2 + $0xc0] sm:$0xff] %vm103_vm0, %v95_v47  ;;  %112 = vst.msk [vmem:[#allocation2 + $0x40] sm:$0xff] %vm103_vm0, %v63_v48 }
  0xa9   : > { %v96_v52 = vpop.trf.xlu1  ;;  %v64_v53 = vpop.trf.xlu0 }
  0xaa   : > { %v151_v49 = vld [vmem:[#allocation2 + $0xa8] ss:$3 sm:$0xff]  ;;  %v186_v50 = vld [vmem:[#allocation2 + $0xa9] ss:$3 sm:$0xff]  ;;  %v221_v51 = vld [vmem:[#allocation2 + $0xaa] ss:$3 sm:$0xff] }
  0xab   : > { %167 = vst.msk [vmem:[%s356_s14 + $0x38] sm:$0xff] %vm103_vm0, %v151_v49  ;;  %268 = vst.msk [vmem:[%s356_s14 + $0x90] sm:$0xff] %vm103_vm0, %v186_v50 }
  0xac   : > { %279 = vst.msk [vmem:[%s356_s14 + $0xe8] sm:$0xff] %vm103_vm0, %v221_v51  ;;  %129 = vst.msk [vmem:[#allocation2 + $0xc8] sm:$0xff] %vm103_vm0, %v96_v52 }
  0xad   : > { %113 = vst.msk [vmem:[#allocation2 + $0x48] sm:$0xff] %vm103_vm0, %v64_v53  ;;  %v141_v54 = vld [vmem:[#allocation2 + $0x30] ss:$3 sm:$0xff]  ;;  %v176_v55 = vld [vmem:[#allocation2 + $0x31] ss:$3 sm:$0xff]  ;;  %v97_v57 = vpop.trf.xlu1  ;;  %v65_v58 = vpop.trf.xlu0 }
  0xae   : > { %v211_v56 = vld [vmem:[#allocation2 + $0x32] ss:$3 sm:$0xff]  ;;  %162 = vst.msk [vmem:[%s356_s14 + $0x10] sm:$0xff] %vm103_vm0, %v141_v54  ;;  %263 = vst.msk [vmem:[%s356_s14 + $0x68] sm:$0xff] %vm103_vm0, %v176_v55 }
  0xaf   : > { %274 = vst.msk [vmem:[%s356_s14 + $0xc0] sm:$0xff] %vm103_vm0, %v211_v56  ;;  %130 = vst.msk [vmem:[#allocation2 + $0xd0] sm:$0xff] %vm103_vm0, %v97_v57 }
  0xb0   : > { %114 = vst.msk [vmem:[#allocation2 + $0x50] sm:$0xff] %vm103_vm0, %v65_v58 }
  0xb1   : > { %v98_v59 = vpop.trf.xlu1  ;;  %v66_v60 = vpop.trf.xlu0 }
  0xb2   : > { %131 = vst.msk [vmem:[#allocation2 + $0xd8] sm:$0xff] %vm103_vm0, %v98_v59  ;;  %115 = vst.msk [vmem:[#allocation2 + $0x58] sm:$0xff] %vm103_vm0, %v66_v60 }
  0xb5   : > { %v99_v0 = vpop.trf.xlu1  ;;  %v67_v1 = vpop.trf.xlu0 }
  0xb6   : > { %v153_v61 = vld [vmem:[#allocation2 + $0xc0] ss:$3 sm:$0xff]  ;;  %v188_v62 = vld [vmem:[#allocation2 + $0xc1] ss:$3 sm:$0xff]  ;;  %v223_v63 = vld [vmem:[#allocation2 + $0xc2] ss:$3 sm:$0xff] }
  0xb7   : > { %168 = vst.msk [vmem:[%s356_s14 + $0x40] sm:$0xff] %vm103_vm0, %v153_v61  ;;  %269 = vst.msk [vmem:[%s356_s14 + $0x98] sm:$0xff] %vm103_vm0, %v188_v62 }
  0xb8   : > { %280 = vst.msk [vmem:[%s356_s14 + $0xf0] sm:$0xff] %vm103_vm0, %v223_v63  ;;  %132 = vst.msk [vmem:[#allocation2 + $0xe0] sm:$0xff] %vm103_vm0, %v99_v0 }
  0xb9   : > { %116 = vst.msk [vmem:[#allocation2 + $0x60] sm:$0xff] %vm103_vm0, %v67_v1  ;;  %v143_v2 = vld [vmem:[#allocation2 + $0x48] ss:$3 sm:$0xff]  ;;  %v178_v3 = vld [vmem:[#allocation2 + $0x49] ss:$3 sm:$0xff]  ;;  %v100_v5 = vpop.trf.xlu1  ;;  %v68_v6 = vpop.trf.xlu0 }
  0xba   : > { %v213_v4 = vld [vmem:[#allocation2 + $0x4a] ss:$3 sm:$0xff]  ;;  %163 = vst.msk [vmem:[%s356_s14 + $0x18] sm:$0xff] %vm103_vm0, %v143_v2  ;;  %264 = vst.msk [vmem:[%s356_s14 + $0x70] sm:$0xff] %vm103_vm0, %v178_v3 }
  0xbb   : > { %275 = vst.msk [vmem:[%s356_s14 + $0xc8] sm:$0xff] %vm103_vm0, %v213_v4  ;;  %133 = vst.msk [vmem:[#allocation2 + $0xe8] sm:$0xff] %vm103_vm0, %v100_v5 }
  0xbc   : > { %117 = vst.msk [vmem:[#allocation2 + $0x68] sm:$0xff] %vm103_vm0, %v68_v6 }
  0xbd   : > { %v101_v7 = vpop.trf.xlu1  ;;  %v69_v8 = vpop.trf.xlu0 }
  0xbe   : > { %134 = vst.msk [vmem:[#allocation2 + $0xf0] sm:$0xff] %vm103_vm0, %v101_v7  ;;  %118 = vst.msk [vmem:[#allocation2 + $0x70] sm:$0xff] %vm103_vm0, %v69_v8 }
  0xc1   : > { %v102_v12 = vpop.trf.xlu1  ;;  %v70_v13 = vpop.trf.xlu0 }
  0xc2   : > { %v155_v9 = vld [vmem:[#allocation2 + $0xd8] ss:$3 sm:$0xff]  ;;  %v190_v10 = vld [vmem:[#allocation2 + $0xd9] ss:$3 sm:$0xff]  ;;  %v225_v11 = vld [vmem:[#allocation2 + $0xda] ss:$3 sm:$0xff] }
  0xc3   : > { %169 = vst.msk [vmem:[%s356_s14 + $0x48] sm:$0xff] %vm103_vm0, %v155_v9  ;;  %270 = vst.msk [vmem:[%s356_s14 + $0xa0] sm:$0xff] %vm103_vm0, %v190_v10 }
  0xc4   : > { %281 = vst.msk [vmem:[%s356_s14 + $0xf8] sm:$0xff] %vm103_vm0, %v225_v11  ;;  %119 = vst.msk [vmem:[#allocation2 + $0x78] sm:$0xff] %vm103_vm0, %v70_v13 }
  0xc5   : > { %136 = vst.msk [vmem:[#allocation2 + $0xf8] sm:$0xf] %vm135_vm1, %v102_v12  ;;  %v145_v14 = vld [vmem:[#allocation2 + $0x60] ss:$3 sm:$0xff]  ;;  %v180_v15 = vld [vmem:[#allocation2 + $0x61] ss:$3 sm:$0xff] }
  0xc6   : > { %v215_v16 = vld [vmem:[#allocation2 + $0x62] ss:$3 sm:$0xff]  ;;  %164 = vst.msk [vmem:[%s356_s14 + $0x20] sm:$0xff] %vm103_vm0, %v145_v14  ;;  %265 = vst.msk [vmem:[%s356_s14 + $0x78] sm:$0xff] %vm103_vm0, %v180_v15 }
  0xc7   : > { %276 = vst.msk [vmem:[%s356_s14 + $0xd0] sm:$0xff] %vm103_vm0, %v215_v16 }
  0xca   :  { %12 = sbr.rel (!%p10_p0) target bundleno = 1 (0x1), region = 67 }
  0xcb   : > { %v147_v20 = vld [vmem:[#allocation2 + $0x78] ss:$3 sm:$0xff]  ;;  %v182_v21 = vld [vmem:[#allocation2 + $0x79] ss:$3 sm:$0xff]  ;;  %v217_v22 = vld [vmem:[#allocation2 + $0x7a] ss:$3 sm:$0xff] }
  0xcc   : > { %v157_v17 = vld [vmem:[#allocation2 + $0xf0] ss:$3 sm:$0xf]  ;;  %v192_v18 = vld [vmem:[#allocation2 + $0xf1] ss:$3 sm:$0xf] }
  0xcd   : > { %170 = vst.msk [vmem:[%s356_s14 + $0x50] sm:$0xf] %vm135_vm1, %v157_v17  ;;  %271 = vst.msk [vmem:[%s356_s14 + $0xa8] sm:$0xf] %vm135_vm1, %v192_v18 }
  0xce   : > { %v227_v19 = vld [vmem:[#allocation2 + $0xf2] ss:$3 sm:$0xf]  ;;  %165 = vst.msk [vmem:[%s356_s14 + $0x28] sm:$0xff] %vm103_vm0, %v147_v20  ;;  %266 = vst.msk [vmem:[%s356_s14 + $0x80] sm:$0xff] %vm103_vm0, %v182_v21 }
  0xcf   : > { %282 = vst.msk [vmem:[%s356_s14 + $0x100] sm:$0xf] %vm135_vm1, %v227_v19 }
  0xd0   : > { %277 = vst.msk [vmem:[%s356_s14 + $0xd8] sm:$0xff] %vm103_vm0, %v217_v22 }

</bundles_post_ra>
